<compile_context>
chip_gen: v5e
topology: v5e:2x2
jax: 0.10.0
libtpu: 0.0.40
codegen_flags: <defaults>
</compile_context>

<pallas_src>
import functools

import jax
import jax.numpy as jnp
from jax.experimental import pallas as pl
from jax.experimental.pallas import tpu as pltpu


# ----------------------------------------------------------------------------
# Fused Pallas kernel: whole ResnetBlock for one batch element
# ----------------------------------------------------------------------------

def _resnet_block_kernel(x_ref, w_ref, o_ref, *, C, H, W):
    """x_ref/o_ref: (C, H*W) lane-dense blocks. w_ref: (2, C, 9*C) packed weights."""
    HW = H * W
    x = x_ref[...]                                            # (C, HW) f32

    # Lane-position helpers for reflection fixups (computed once, reused by both convs).
    col = jax.lax.broadcasted_iota(jnp.int32, (C, HW), 1)
    wpos = col % W
    first_col = wpos == 0
    last_col = wpos == W - 1
    first_row = col < W
    last_row = col >= (H - 1) * W

    def patches_3x3_reflect(v):
        # (9*C, HW) im2col patches of ReflectionPad2d(1)(v) for a 3x3 conv, built from
        # lane rolls + border selects (no padded copy). Row order: (i*3+j)*C + cin.
        vl = pltpu.roll(v, shift=1, axis=1)         # p -> v[p-1]
        vr = pltpu.roll(v, shift=HW - 1, axis=1)    # p -> v[p+1]
        w_m1 = jnp.where(first_col, vr, vl)         # x[.., w-1], reflect at w=0   -> w=1
        w_p1 = jnp.where(last_col, vl, vr)          # x[.., w+1], reflect at w=W-1 -> w=W-2
        w_shifts = (w_m1, v, w_p1)                  # dw = -1, 0, +1

        def h_shift(u, dh):
            if dh == 0:
                return u
            uu = pltpu.roll(u, shift=W, axis=1)         # p -> u[p-W]  (row above)
            ud = pltpu.roll(u, shift=HW - W, axis=1)    # p -> u[p+W]  (row below)
            if dh < 0:
                return jnp.where(first_row, ud, uu)     # reflect at h=0   -> h=1
            return jnp.where(last_row, uu, ud)          # reflect at h=H-1 -> h=H-2

        rows = [h_shift(u, dh) for dh in (-1, 0, 1) for u in w_shifts]
        return jnp.concatenate(rows, axis=0)            # (9C, HW)

    ones_hw = jnp.ones((HW, 1), jnp.float32)

    def instance_norm(v):
        # InstanceNorm2d(affine=False, eps=1e-5); two-pass variance; HW reductions on
        # the idle MXU instead of the XLU lane-reduce path.
        inv = 1.0 / HW
        mean = jnp.dot(v, ones_hw, preferred_element_type=jnp.float32) * inv       # (C,1)
        c = v - mean
        var = jnp.dot(c * c, ones_hw, preferred_element_type=jnp.float32) * inv    # (C,1)
        return c * jax.lax.rsqrt(var + 1e-5)

    def conv3x3_reflect(v, w_mat):                      # w_mat: (C, 9C)
        return jnp.dot(w_mat, patches_3x3_reflect(v),
                       preferred_element_type=jnp.float32)       # (C, HW)

    y = jnp.maximum(instance_norm(conv3x3_reflect(x, w_ref[0])), 0.0)   # conv1 -> IN -> ReLU
    y = instance_norm(conv3x3_reflect(y, w_ref[1]))                     # conv2 -> IN
    o_ref[...] = x + y                                                  # residual add


# ----------------------------------------------------------------------------
# Wrapper (NCHW in / NCHW out, like PyTorch)
# ----------------------------------------------------------------------------

def resnet_block(x_nchw, w1_hwio, w2_hwio):
    """x: (N, C, H, W); w*: (3, 3, Cin, Cout) HWIO, Cin == Cout == C, no bias."""
    N, C, H, W = x_nchw.shape
    HW = H * W
    x_flat = x_nchw.reshape(N, C, HW).astype(jnp.float32)       # free reshape, lane-dense
    # HWIO (3,3,C,C) -> (C_out, 9*C_in); column k = (i*3+j)*C + ci matches patch row order.
    w_pack = jnp.stack(
        [w1_hwio.astype(jnp.float32).reshape(9 * C, C).T,
         w2_hwio.astype(jnp.float32).reshape(9 * C, C).T], axis=0)      # (2, C, 9C)

    kern = functools.partial(_resnet_block_kernel, C=C, H=H, W=W)
    out = pl.pallas_call(
        kern,
        out_shape=jax.ShapeDtypeStruct((N, C, HW), jnp.float32),
        grid=(N,),
        in_specs=[
            pl.BlockSpec((None, C, HW), lambda n: (n, 0, 0)),
            pl.BlockSpec((2, C, 9 * C), lambda n: (0, 0, 0)),   # constant -> VMEM-resident
        ],
        out_specs=pl.BlockSpec((None, C, HW), lambda n: (n, 0, 0)),
        compiler_params=pltpu.CompilerParams(dimension_semantics=("parallel",)),
    )(x_flat, w_pack)
    return out.reshape(N, C, H, W)


# ----------------------------------------------------------------------------
# Pure-JAX reference (correctness check)
# ----------------------------------------------------------------------------

def _ref_conv3x3_reflect(x_nchw, w_hwio):
    xp = jnp.pad(x_nchw, ((0, 0), (0, 0), (1, 1), (1, 1)), mode="reflect")
    return jax.lax.conv_general_dilated(
        xp, w_hwio, window_strides=(1, 1), padding="VALID",
        dimension_numbers=("NCHW", "HWIO", "NCHW"),
        precision=jax.lax.Precision.HIGHEST)


def _ref_instance_norm(v):
    mean = jnp.mean(v, axis=(2, 3), keepdims=True)
    var = jnp.mean(jnp.square(v - mean), axis=(2, 3), keepdims=True)
    return (v - mean) * jax.lax.rsqrt(var + 1e-5)


def ref_resnet_block(x_nchw, w1_hwio, w2_hwio):
    x = x_nchw.astype(jnp.float32)
    y = jnp.maximum(_ref_instance_norm(_ref_conv3x3_reflect(x, w1_hwio)), 0.0)
    y = _ref_instance_norm(_ref_conv3x3_reflect(y, w2_hwio))
    return x + y


# ----------------------------------------------------------------------------

if __name__ == "__main__":
    key = jax.random.PRNGKey(0)
    kx, k1, k2 = jax.random.split(key, 3)

    N, dim, H, W = 2, 4, 16, 16
    x = jax.random.normal(kx, (N, dim, H, W), jnp.float32)                  # NCHW like PyTorch
    w1 = jax.random.normal(k1, (3, 3, dim, dim), jnp.float32) / jnp.sqrt(9.0 * dim)
    w2 = jax.random.normal(k2, (3, 3, dim, dim), jnp.float32) / jnp.sqrt(9.0 * dim)

    out = jax.block_until_ready(resnet_block(x, w1, w2))
    assert out.shape == (N, dim, H, W), out.shape

    ref = jax.block_until_ready(ref_resnet_block(x, w1, w2))
    if not jnp.allclose(out, ref, atol=5e-3, rtol=5e-3):
        max_err = float(jnp.max(jnp.abs(out - ref)))
        raise AssertionError(f"Pallas output mismatch vs reference, max abs err={max_err}")

    print("KERNEL_OK")
</pallas_src>

<mosaic_0001>
module attributes {stable_mosaic.version = 11 : i64} {
  func.func @_resnet_block_kernel(%arg0: i32, %arg1: memref<1x4x256xf32, #tpu.memory_space<vmem>>, %arg2: memref<2x4x36xf32, #tpu.memory_space<vmem>>, %arg3: memref<1x4x256xf32, #tpu.memory_space<vmem>>) attributes {dimension_semantics = [#tpu.dimension_semantics<parallel>], iteration_bounds = array<i64: 2>, scalar_prefetch = 0 : i64, scratch_operands = 0 : i64, tpu.core_type = #tpu.core_type<tc>, window_params = [{transform_indices = @transform_0, window_bounds = array<i64: 1, 4, 256>}, {pipeline_mode = #tpu.pipeline_mode<synchronous>, transform_indices = @transform_1, window_bounds = array<i64: 2, 4, 36>}, {transform_indices = @transform_2, window_bounds = array<i64: 1, 4, 256>}]} {
    %c0 = arith.constant 0 : index
    %c0_0 = arith.constant 0 : index
    %c0_1 = arith.constant 0 : index
    %0 = vector.load %arg1[%c0, %c0_0, %c0_1] : memref<1x4x256xf32, #tpu.memory_space<vmem>>, vector<1x4x256xf32>
    %1 = vector.shape_cast %0 : vector<1x4x256xf32> to vector<4x256xf32>
    %2 = tpu.iota {dimensions = array<i32: 1>} : vector<4x256xi32>
    %c16_i32 = arith.constant 16 : i32
    %c0_i32 = arith.constant 0 : i32
    %3 = arith.cmpi eq, %c16_i32, %c0_i32 : i32
    %c1_i32 = arith.constant 1 : i32
    %4 = arith.select %3, %c1_i32, %c16_i32 : i32
    %5 = vector.broadcast %4 : i32 to vector<4x256xi32>
    %6 = arith.remsi %2, %5 : vector<4x256xi32>
    %c0_i32_2 = arith.constant 0 : i32
    %7 = vector.broadcast %c0_i32_2 : i32 to vector<4x256xi32>
    %8 = arith.cmpi ne, %6, %7 : vector<4x256xi32>
    %c0_i32_3 = arith.constant 0 : i32
    %9 = vector.broadcast %c0_i32_3 : i32 to vector<4x256xi32>
    %10 = arith.cmpi slt, %6, %9 : vector<4x256xi32>
    %c0_i32_4 = arith.constant 0 : i32
    %11 = arith.cmpi slt, %4, %c0_i32_4 : i32
    %12 = vector.broadcast %11 : i1 to vector<4x256xi1>
    %13 = vector.broadcast %12 : vector<4x256xi1> to vector<4x256xi1>
    %14 = arith.xori %10, %13 : vector<4x256xi1>
    %15 = arith.andi %14, %8 : vector<4x256xi1>
    %16 = vector.broadcast %4 : i32 to vector<4x256xi32>
    %17 = arith.addi %6, %16 : vector<4x256xi32>
    %18 = arith.select %15, %17, %6 : vector<4x256xi1>, vector<4x256xi32>
    %c0_i32_5 = arith.constant 0 : i32
    %19 = vector.broadcast %c0_i32_5 : i32 to vector<4x256xi32>
    %20 = arith.cmpi eq, %18, %19 : vector<4x256xi32>
    %c15_i32 = arith.constant 15 : i32
    %21 = vector.broadcast %c15_i32 : i32 to vector<4x256xi32>
    %22 = arith.cmpi eq, %18, %21 : vector<4x256xi32>
    %c16_i32_6 = arith.constant 16 : i32
    %23 = vector.broadcast %c16_i32_6 : i32 to vector<4x256xi32>
    %24 = arith.cmpi slt, %2, %23 : vector<4x256xi32>
    %c240_i32 = arith.constant 240 : i32
    %25 = vector.broadcast %c240_i32 : i32 to vector<4x256xi32>
    %26 = arith.cmpi sge, %2, %25 : vector<4x256xi32>
    %cst = arith.constant 1.000000e+00 : f32
    %27 = vector.broadcast %cst : f32 to vector<256x1xf32>
    %c0_7 = arith.constant 0 : index
    %c0_8 = arith.constant 0 : index
    %c0_9 = arith.constant 0 : index
    %28 = vector.load %arg2[%c0_7, %c0_8, %c0_9] : memref<2x4x36xf32, #tpu.memory_space<vmem>>, vector<1x4x36xf32>
    %29 = vector.shape_cast %28 : vector<1x4x36xf32> to vector<4x36xf32>
    %c1_i32_10 = arith.constant 1 : i32
    %30 = tpu.dynamic_rotate %1 by %c1_i32_10 dim 1 : vector<4x256xf32>, i32 -> vector<4x256xf32>
    %c255_i32 = arith.constant 255 : i32
    %31 = tpu.dynamic_rotate %1 by %c255_i32 dim 1 : vector<4x256xf32>, i32 -> vector<4x256xf32>
    %32 = arith.select %20, %31, %30 : vector<4x256xi1>, vector<4x256xf32>
    %33 = arith.select %22, %30, %31 : vector<4x256xi1>, vector<4x256xf32>
    %c16_i32_11 = arith.constant 16 : i32
    %34 = tpu.dynamic_rotate %32 by %c16_i32_11 dim 1 : vector<4x256xf32>, i32 -> vector<4x256xf32>
    %c240_i32_12 = arith.constant 240 : i32
    %35 = tpu.dynamic_rotate %32 by %c240_i32_12 dim 1 : vector<4x256xf32>, i32 -> vector<4x256xf32>
    %36 = arith.select %24, %35, %34 : vector<4x256xi1>, vector<4x256xf32>
    %c16_i32_13 = arith.constant 16 : i32
    %37 = tpu.dynamic_rotate %1 by %c16_i32_13 dim 1 : vector<4x256xf32>, i32 -> vector<4x256xf32>
    %c240_i32_14 = arith.constant 240 : i32
    %38 = tpu.dynamic_rotate %1 by %c240_i32_14 dim 1 : vector<4x256xf32>, i32 -> vector<4x256xf32>
    %39 = arith.select %24, %38, %37 : vector<4x256xi1>, vector<4x256xf32>
    %c16_i32_15 = arith.constant 16 : i32
    %40 = tpu.dynamic_rotate %33 by %c16_i32_15 dim 1 : vector<4x256xf32>, i32 -> vector<4x256xf32>
    %c240_i32_16 = arith.constant 240 : i32
    %41 = tpu.dynamic_rotate %33 by %c240_i32_16 dim 1 : vector<4x256xf32>, i32 -> vector<4x256xf32>
    %42 = arith.select %24, %41, %40 : vector<4x256xi1>, vector<4x256xf32>
    %c16_i32_17 = arith.constant 16 : i32
    %43 = tpu.dynamic_rotate %32 by %c16_i32_17 dim 1 : vector<4x256xf32>, i32 -> vector<4x256xf32>
    %c240_i32_18 = arith.constant 240 : i32
    %44 = tpu.dynamic_rotate %32 by %c240_i32_18 dim 1 : vector<4x256xf32>, i32 -> vector<4x256xf32>
    %45 = arith.select %26, %43, %44 : vector<4x256xi1>, vector<4x256xf32>
    %c16_i32_19 = arith.constant 16 : i32
    %46 = tpu.dynamic_rotate %1 by %c16_i32_19 dim 1 : vector<4x256xf32>, i32 -> vector<4x256xf32>
    %c240_i32_20 = arith.constant 240 : i32
    %47 = tpu.dynamic_rotate %1 by %c240_i32_20 dim 1 : vector<4x256xf32>, i32 -> vector<4x256xf32>
    %48 = arith.select %26, %46, %47 : vector<4x256xi1>, vector<4x256xf32>
    %c16_i32_21 = arith.constant 16 : i32
    %49 = tpu.dynamic_rotate %33 by %c16_i32_21 dim 1 : vector<4x256xf32>, i32 -> vector<4x256xf32>
    %c240_i32_22 = arith.constant 240 : i32
    %50 = tpu.dynamic_rotate %33 by %c240_i32_22 dim 1 : vector<4x256xf32>, i32 -> vector<4x256xf32>
    %51 = arith.select %26, %49, %50 : vector<4x256xi1>, vector<4x256xf32>
    %52 = tpu.concatenate %36, %39, %42, %32, %1, %33, %45, %48, %51 in 0 : vector<4x256xf32>, vector<4x256xf32>, vector<4x256xf32>, vector<4x256xf32>, vector<4x256xf32>, vector<4x256xf32>, vector<4x256xf32>, vector<4x256xf32>, vector<4x256xf32> -> vector<36x256xf32>
    %cst_23 = arith.constant dense<0.000000e+00> : vector<4x256xf32>
    %53 = tpu.matmul %29, %52, %cst_23 {dimension_numbers = #tpu.dot_dimension_numbers<[1], [0], [0], [1], [0, 0, 1, 1], [], []>} : vector<4x36xf32>, vector<36x256xf32>, vector<4x256xf32> -> vector<4x256xf32>
    %cst_24 = arith.constant dense<0.000000e+00> : vector<4x1xf32>
    %54 = tpu.matmul %53, %27, %cst_24 {dimension_numbers = #tpu.dot_dimension_numbers<[1], [0], [0], [1], [0, 0, 1, 1], [], []>} : vector<4x256xf32>, vector<256x1xf32>, vector<4x1xf32> -> vector<4x1xf32>
    %cst_25 = arith.constant 3.906250e-03 : f32
    %55 = vector.broadcast %cst_25 : f32 to vector<4x1xf32>
    %56 = arith.mulf %54, %55 : vector<4x1xf32>
    %57 = vector.broadcast %56 : vector<4x1xf32> to vector<4x256xf32>
    %58 = arith.subf %53, %57 : vector<4x256xf32>
    %59 = arith.mulf %58, %58 : vector<4x256xf32>
    %cst_26 = arith.constant dense<0.000000e+00> : vector<4x1xf32>
    %60 = tpu.matmul %59, %27, %cst_26 {dimension_numbers = #tpu.dot_dimension_numbers<[1], [0], [0], [1], [0, 0, 1, 1], [], []>} : vector<4x256xf32>, vector<256x1xf32>, vector<4x1xf32> -> vector<4x1xf32>
    %cst_27 = arith.constant 3.906250e-03 : f32
    %61 = vector.broadcast %cst_27 : f32 to vector<4x1xf32>
    %62 = arith.mulf %60, %61 : vector<4x1xf32>
    %cst_28 = arith.constant 9.99999974E-6 : f32
    %63 = vector.broadcast %cst_28 : f32 to vector<4x1xf32>
    %64 = arith.addf %62, %63 : vector<4x1xf32>
    %65 = math.rsqrt %64 : vector<4x1xf32>
    %66 = vector.broadcast %65 : vector<4x1xf32> to vector<4x256xf32>
    %67 = arith.mulf %58, %66 : vector<4x256xf32>
    %cst_29 = arith.constant 0.000000e+00 : f32
    %68 = vector.broadcast %cst_29 : f32 to vector<4x256xf32>
    %69 = arith.maximumf %67, %68 : vector<4x256xf32>
    %c1 = arith.constant 1 : index
    %c0_30 = arith.constant 0 : index
    %c0_31 = arith.constant 0 : index
    %70 = vector.load %arg2[%c1, %c0_30, %c0_31] : memref<2x4x36xf32, #tpu.memory_space<vmem>>, vector<1x4x36xf32>
    %71 = vector.shape_cast %70 : vector<1x4x36xf32> to vector<4x36xf32>
    %c1_i32_32 = arith.constant 1 : i32
    %72 = tpu.dynamic_rotate %69 by %c1_i32_32 dim 1 : vector<4x256xf32>, i32 -> vector<4x256xf32>
    %c255_i32_33 = arith.constant 255 : i32
    %73 = tpu.dynamic_rotate %69 by %c255_i32_33 dim 1 : vector<4x256xf32>, i32 -> vector<4x256xf32>
    %74 = arith.select %20, %73, %72 : vector<4x256xi1>, vector<4x256xf32>
    %75 = arith.select %22, %72, %73 : vector<4x256xi1>, vector<4x256xf32>
    %c16_i32_34 = arith.constant 16 : i32
    %76 = tpu.dynamic_rotate %74 by %c16_i32_34 dim 1 : vector<4x256xf32>, i32 -> vector<4x256xf32>
    %c240_i32_35 = arith.constant 240 : i32
    %77 = tpu.dynamic_rotate %74 by %c240_i32_35 dim 1 : vector<4x256xf32>, i32 -> vector<4x256xf32>
    %78 = arith.select %24, %77, %76 : vector<4x256xi1>, vector<4x256xf32>
    %c16_i32_36 = arith.constant 16 : i32
    %79 = tpu.dynamic_rotate %69 by %c16_i32_36 dim 1 : vector<4x256xf32>, i32 -> vector<4x256xf32>
    %c240_i32_37 = arith.constant 240 : i32
    %80 = tpu.dynamic_rotate %69 by %c240_i32_37 dim 1 : vector<4x256xf32>, i32 -> vector<4x256xf32>
    %81 = arith.select %24, %80, %79 : vector<4x256xi1>, vector<4x256xf32>
    %c16_i32_38 = arith.constant 16 : i32
    %82 = tpu.dynamic_rotate %75 by %c16_i32_38 dim 1 : vector<4x256xf32>, i32 -> vector<4x256xf32>
    %c240_i32_39 = arith.constant 240 : i32
    %83 = tpu.dynamic_rotate %75 by %c240_i32_39 dim 1 : vector<4x256xf32>, i32 -> vector<4x256xf32>
    %84 = arith.select %24, %83, %82 : vector<4x256xi1>, vector<4x256xf32>
    %c16_i32_40 = arith.constant 16 : i32
    %85 = tpu.dynamic_rotate %74 by %c16_i32_40 dim 1 : vector<4x256xf32>, i32 -> vector<4x256xf32>
    %c240_i32_41 = arith.constant 240 : i32
    %86 = tpu.dynamic_rotate %74 by %c240_i32_41 dim 1 : vector<4x256xf32>, i32 -> vector<4x256xf32>
    %87 = arith.select %26, %85, %86 : vector<4x256xi1>, vector<4x256xf32>
    %c16_i32_42 = arith.constant 16 : i32
    %88 = tpu.dynamic_rotate %69 by %c16_i32_42 dim 1 : vector<4x256xf32>, i32 -> vector<4x256xf32>
    %c240_i32_43 = arith.constant 240 : i32
    %89 = tpu.dynamic_rotate %69 by %c240_i32_43 dim 1 : vector<4x256xf32>, i32 -> vector<4x256xf32>
    %90 = arith.select %26, %88, %89 : vector<4x256xi1>, vector<4x256xf32>
    %c16_i32_44 = arith.constant 16 : i32
    %91 = tpu.dynamic_rotate %75 by %c16_i32_44 dim 1 : vector<4x256xf32>, i32 -> vector<4x256xf32>
    %c240_i32_45 = arith.constant 240 : i32
    %92 = tpu.dynamic_rotate %75 by %c240_i32_45 dim 1 : vector<4x256xf32>, i32 -> vector<4x256xf32>
    %93 = arith.select %26, %91, %92 : vector<4x256xi1>, vector<4x256xf32>
    %94 = tpu.concatenate %78, %81, %84, %74, %69, %75, %87, %90, %93 in 0 : vector<4x256xf32>, vector<4x256xf32>, vector<4x256xf32>, vector<4x256xf32>, vector<4x256xf32>, vector<4x256xf32>, vector<4x256xf32>, vector<4x256xf32>, vector<4x256xf32> -> vector<36x256xf32>
    %cst_46 = arith.constant dense<0.000000e+00> : vector<4x256xf32>
    %95 = tpu.matmul %71, %94, %cst_46 {dimension_numbers = #tpu.dot_dimension_numbers<[1], [0], [0], [1], [0, 0, 1, 1], [], []>} : vector<4x36xf32>, vector<36x256xf32>, vector<4x256xf32> -> vector<4x256xf32>
    %cst_47 = arith.constant dense<0.000000e+00> : vector<4x1xf32>
    %96 = tpu.matmul %95, %27, %cst_47 {dimension_numbers = #tpu.dot_dimension_numbers<[1], [0], [0], [1], [0, 0, 1, 1], [], []>} : vector<4x256xf32>, vector<256x1xf32>, vector<4x1xf32> -> vector<4x1xf32>
    %cst_48 = arith.constant 3.906250e-03 : f32
    %97 = vector.broadcast %cst_48 : f32 to vector<4x1xf32>
    %98 = arith.mulf %96, %97 : vector<4x1xf32>
    %99 = vector.broadcast %98 : vector<4x1xf32> to vector<4x256xf32>
    %100 = arith.subf %95, %99 : vector<4x256xf32>
    %101 = arith.mulf %100, %100 : vector<4x256xf32>
    %cst_49 = arith.constant dense<0.000000e+00> : vector<4x1xf32>
    %102 = tpu.matmul %101, %27, %cst_49 {dimension_numbers = #tpu.dot_dimension_numbers<[1], [0], [0], [1], [0, 0, 1, 1], [], []>} : vector<4x256xf32>, vector<256x1xf32>, vector<4x1xf32> -> vector<4x1xf32>
    %cst_50 = arith.constant 3.906250e-03 : f32
    %103 = vector.broadcast %cst_50 : f32 to vector<4x1xf32>
    %104 = arith.mulf %102, %103 : vector<4x1xf32>
    %cst_51 = arith.constant 9.99999974E-6 : f32
    %105 = vector.broadcast %cst_51 : f32 to vector<4x1xf32>
    %106 = arith.addf %104, %105 : vector<4x1xf32>
    %107 = math.rsqrt %106 : vector<4x1xf32>
    %108 = vector.broadcast %107 : vector<4x1xf32> to vector<4x256xf32>
    %109 = arith.mulf %100, %108 : vector<4x256xf32>
    %110 = arith.addf %1, %109 : vector<4x256xf32>
    %c0_52 = arith.constant 0 : index
    %c0_53 = arith.constant 0 : index
    %c0_54 = arith.constant 0 : index
    %111 = vector.load %arg3[%c0_52, %c0_53, %c0_54] : memref<1x4x256xf32, #tpu.memory_space<vmem>>, vector<1x4x256xf32>
    %112 = vector.shape_cast %111 : vector<1x4x256xf32> to vector<4x256xf32>
    %113 = vector.shape_cast %110 : vector<4x256xf32> to vector<1x4x256xf32>
    tpu.vector_store %arg3[%c0_52, %c0_53, %c0_54], %113 {strides = array<i32>} : memref<1x4x256xf32, #tpu.memory_space<vmem>>, vector<1x4x256xf32>,
    return
  }
  func.func @transform_0(%arg0: i32) -> (i32, i32, i32) {
    %c0_i32 = arith.constant 0 : i32
    %c0_i32_0 = arith.constant 0 : i32
    %c0_i32_1 = arith.constant 0 : i32
    return %arg0, %c0_i32, %c0_i32_0 : i32, i32, i32
  }
  func.func @transform_1(%arg0: i32) -> (i32, i32, i32) {
    %c0_i32 = arith.constant 0 : i32
    %c0_i32_0 = arith.constant 0 : i32
    %c0_i32_1 = arith.constant 0 : i32
    %c0_i32_2 = arith.constant 0 : i32
    return %c0_i32, %c0_i32_0, %c0_i32_1 : i32, i32, i32
  }
  func.func @transform_2(%arg0: i32) -> (i32, i32, i32) {
    %c0_i32 = arith.constant 0 : i32
    %c0_i32_0 = arith.constant 0 : i32
    %c0_i32_1 = arith.constant 0 : i32
    return %arg0, %c0_i32, %c0_i32_0 : i32, i32, i32
  }
}

</mosaic_0001>

<bundles_post_ra>
// kernel: tpu_custom_call.1
= control target key start
LH: loop header
LB: loop body
LE: loop exit
PB: predicated region body
PF: predicated region fallthrough
CT: control target
= control target key end

     0   :  { %7 = vsyncpa [#allocation3], 0  ;;  %s1647_s0 = inlined_call_operand.hbm [shape: f32[2,4,256], index: 0, kind: input, shape index: {}]   ;;  %s1648_s1 = inlined_call_operand.hbm [shape: f32[2,4,36], index: 1, kind: input, shape index: {}]   ;;  %s1649_s2 = inlined_call_operand.hbm [shape: f32[2,4,256], index: 2, kind: output, shape index: {}]  }
   0x1   :  { %9 = vsyncpa [#allocation3 + $0x1], 0 }
   0x2   :  { %10 = vsyncpa [#allocation6], 0 }
   0x3   :  { %11 = vsyncpa [#allocation4], 0 }
   0x4   :  { %13 = vsyncpa [#allocation4 + $0x1], 0  ;;  %s1156_s9 = smov 0   ;;  %s1158_s10 = smov 0  }
   0x5   :  { %s1160_s11 = smov 0   ;;  %s1162_s12 = smov 0  }
   0x6 LB: > { %s108_s15 = sshll.u32 %s1648_s1, 4  ;;  %s1180_s16 = sadd.s32 4294967295, %s1130_s12   ;;  %s1130_s12 = sphi %s1162_s12, %s1667_s12   ;;  %s1126_s11 = sphi %s1160_s11, %s1666_s11   ;;  %s1122_s10 = sphi %s1158_s10, %s1665_s10   ;;  %s1118_s9 = sphi %s1156_s9, %s1664_s9   ;;  %s109_s15 = int_to_ptr.hbm [resolvable:$true] %s108_s15 }
   0x7   : > { %p864_p0 = scmp.ge.s32.totalorder %s1130_s12, 1  ;;  %p40_p1 = scmp.eq.s32.totalorder %s1180_s16, 0 }
   0x8   : > { %p97_p2 = scmp.lt.s32.totalorder %s1130_s12, 3  ;;  %s1132_s18 = smov [#allocation5]  }
   0x9   : > { %s110_s19 = sshll.u32 %s1132_s18, 4  ;;  %s1133_s20 = smov 64   ;;  %s111_s19 = int_to_ptr.vmem [resolvable:$true] %s110_s19 }
   0xa   : > { %p1185_p3 = pnand %p864_p0, %p97_p2  ;;  %s1134_s21 = smov 4  }
   0xb   : > { %s863_s22 = sadd.s32 4294967294, %s1130_s12   ;;  %s1196_s23 = sadd.s32 1, %s1130_s12  }
   0xc   : > { %p897_p4 = pneg %p1185_p3  ;;  %s26_s24 = sadd.s32 1, %s1126_s11 }
   0xd   : > { %s23_s25 = ssub.s32 %s1130_s12, %s1196_s23  ;;  %p33_p7 = scmp.ne.s32.totalorder %s1126_s11, %s1122_s10 }
   0xe   : > { %p898_p6 = pnand %p897_p4, %p40_p1  ;;  %p24_p8 = scmp.eq.s32.totalorder %s23_s25, 0 }
   0xf   : > { %p34_p9 = scmp.eq.s32.totalorder %s1130_s12, 0  ;;  %p39_p10 = scmp.ne.s32.totalorder %s1122_s10, %s1118_s9 }
  0x10   : > { %900 = dma.hbm_to_vmem [thread:$0]  (!%p898_p6), %s109_s15, 128, %s111_s19, [#allocation6], %s1133_s20, %s1133_s20, %s1134_s21  }
  0x11   : > { %p84_p11 = scmp.eq.s32.totalorder %s1180_s16, 1  ;;  %p1212_p12 = por %p40_p1, %p39_p10 }
  0x12   : > { %s1208_s26 = scalar_select %p24_p8, %s1126_s11, %s26_s24  }
  0x13   : > { %p1216_p13 = por %p84_p11, %p33_p7  ;;  %p90_p0 = scmp.eq.s32.totalorder %s863_s22, 1 }
  0x14   : > { %p35_p2 = por %p34_p9, %p33_p7  ;;  %s124_s29 = sand.u32 1, %s1126_s11  }
  0x15   : > { %p1221_p4 = por %p90_p0, %p39_p10  ;;  %p910_p6 = scmp.lt.s32.totalorder %s1130_s12, 2 }
  0x16   : > { %s867_s3 = sshll.u32 %s124_s29, 3  ;;  %s887_s4 = sshll.u32 %s1130_s12, 3 }
  0x17   : > { %s133_s7 = scalar_lea.hbm %s1647_s0, %s887_s4  ;;  %s128_s13 = scalar_lea.vmem [#allocation2], %s867_s3 }
  0x18   : > { %s135_s8 = sshll.u32 %s133_s7, 4  ;;  %s137_s14 = sshll.u32 %s128_s13, 4  ;;  %s136_s8 = int_to_ptr.hbm [resolvable:$true] %s135_s8  ;;  %s138_s14 = int_to_ptr.vmem [resolvable:$true] %s137_s14 }
  0x19   : > { %p1230_p8 = pnand %p910_p6, %p35_p2  ;;  %s125_s18 = scalar_lea.sflag [#allocation3], %s124_s29 }
  0x1a   : > { %s1030_s19 = sshra.s32 %s136_s8, 4  ;;  %s1037_s24 = scalar_lea.hbm %s1647_s0, 16  ;;  %s1031_s19 = int_to_ptr.hbm [resolvable:$true] %s1030_s19 }
  0x1b   : > { %s1032_s20 = scalar_lea.hbm %s1031_s19, 8  ;;  %p1034_p9 = pneg %p1230_p8 }
  0x1c   : > { %p1033_p7 = scmp.ne.s32.totalorder %s1031_s19, %s1032_s20  ;;  %p1038_p0 = scmp.lt.s32.totalorder %s1031_s19, %s1647_s0 }
  0x1d   : > { %p1039_p2 = scmp.lt.s32.totalorder %s1037_s24, %s1032_s20 }
  0x1e   : > { %p1035_p10 = pnand %p1034_p9, %p1033_p7 }
  0x1f   : > { %p1040_p6 = por %p1039_p2, %p1038_p0 }
  0x20   : > { %p1036_p11 = pneg %p1035_p10 }
  0x22   : > { %p1041_p5 = pnand %p1040_p6, %p1036_p11 }
  0x24   : > { %1044 = shalt.err (!%p1041_p5)
}
  0x25   : > { %904 = dma.hbm_to_vmem [thread:$0]  (!%p1230_p8), %s136_s8, 128, %s138_s14, %s125_s18  }
  0x26   : > { %146 = sbr.rel (%p1185_p3) target bundleno = 1887 (0x75f), region = 28  ;;  %s1247_s29 = sand.u32 (!%p1185_p3), 1, %s1122_s10  }
  0x27   : > { %s871_s4 = sshll.u32 (!%p1185_p3), %s1247_s29, 3  ;;  %s149_s5 = scalar_lea.sflag (!%p1185_p3), [#allocation3], %s1247_s29 }
  0x28   : > { %s152_s6 = scalar_lea.vmem (!%p1185_p3), [#allocation2], %s871_s4 }
  0x2b   : > { %1105 = dma.done.wait (%p1212_p12), %s149_s5, 128  }
  0x2c   : > { %1107 = vsyncadd (%p1212_p12), %s149_s5, 4294967168 }
  0x2d   : > { %1109 = dma.done.wait (%p40_p1), [#allocation6], 128  }
  0x2e   : > { %1111 = vsyncadd (%p40_p1), [#allocation6], 4294967168  ;;  %v1261_v0 = vld [vmem:[%s152_s6] sm:$0xff]  ;;  %s1135_s17 = smov 1   ;;  %s1136_s27 = smov 127   ;;  %v180_v11 = vlaneseq  ;;  %v1139_v36 = vmov 1.0  }
  0x2f   : > { %217 = vst [vmem:[#allocation1] ss:$2 sm:$0xff] %v1261_v0  ;;  %s1137_s7 = smov 16   ;;  %s1138_s8 = smov 112   ;;  %392 = vmatpush.msra.mxu2 %v1139_v36  ;;  %412 = vmatpush.msra.mxu3 %v1139_v36  ;;  %vm333_vm9 = vcmask 1043456   ;;  %vm342_vm10 = vcmask 293888  }
  0x30   : > { %v1274_v13 = vand.u32 127, %v180_v11  ;;  %s888_s13 = sshll.u32 %s1180_s16, 3  ;;  %s178_s19 = scalar_lea.vmem [#allocation7], %s871_s4 }
  0x31   : > { %393 = vmatpush.msra.mxu2 %v1139_v36  ;;  %413 = vmatpush.msra.mxu3 %v1139_v36  ;;  %s778_s18 = scalar_lea.hbm %s1649_s2, %s888_s13  ;;  %s780_s20 = sshll.u32 %s178_s19, 4  ;;  %s781_s20 = int_to_ptr.vmem [resolvable:$true] %s780_s20 }
  0x32   : > { %v1277_v14 = vadd.s32 128, %v1274_v13  ;;  %v187_v16 = vand.u32 15, %v1274_v13  ;;  %vm226_vm0 = vcmp.lt.s32.totalorder %v1274_v13, 1  ;;  %vm238_vm1 = vcmp.lt.s32.totalorder %v1274_v13, 127  ;;  %s782_s21 = sshll.u32 %s778_s18, 4  ;;  %s767_s16 = scalar_lea.sflag [#allocation4], %s1247_s29  ;;  %s783_s21 = int_to_ptr.hbm [resolvable:$true] %s782_s21 }
  0x33   : > { %394 = vmatpush.msra.mxu2 %v1139_v36  ;;  %414 = vmatpush.msra.mxu3 %v1139_v36  ;;  %vm255_vm6 = vcmp.lt.s32.totalorder %v1274_v13, 112  ;;  %vm211_vm7 = vcmp.lt.s32.totalorder %v1274_v13, 16  ;;  %s1074_s22 = sshra.s32 %s783_s21, 4  ;;  %s1080_s4 = scalar_lea.hbm %s1649_s2, 16  ;;  %s1075_s22 = int_to_ptr.hbm [resolvable:$true] %s1074_s22 }
  0x34   : > { %v194_v17 = vand.u32 15, %v1277_v14  ;;  %vm1287_vm3 = vcmp.eq.s32.totalorder %v187_v16, 15  ;;  %vm1307_vm4 = vcmp.eq.s32.totalorder %v187_v16, 0  ;;  %vm214_vm8 = vcmp.ge.s32.totalorder %v1277_v14, 240  ;;  %s1076_s24 = scalar_lea.hbm %s1075_s22, 8  ;;  %p1081_p12 = scmp.lt.s32.totalorder %s1075_s22, %s1649_s2 }
  0x35   : > { %395 = vmatpush.msra.mxu2 %v1139_v36  ;;  %415 = vmatpush.msra.mxu3 %v1139_v36  ;;  %p1077_p1 = scmp.ne.s32.totalorder %s1075_s22, %s1076_s24  ;;  %p1082_p8 = scmp.lt.s32.totalorder %s1080_s4, %s1076_s24 }
  0x36   : > { %v218_v1 = vld.sshfl [vmem:[#allocation1] sm:$0xff pattern:$0x75316420]  ;;  %v219_v2 = vld.sshfl [vmem:[#allocation1 + $0x8] sm:$0xff pattern:$0x75316420] }
  0x37   : > { %222 = vrot.lane.b32.xlu0 %v218_v1, %s1135_s17  ;;  %229 = vst [vmem:[#allocation1] ss:$2 sm:$0xff] %v1261_v0  ;;  %vm1283_vm2 = vcmp.eq.s32.totalorder %v194_v17, 15  ;;  %vm1311_vm5 = vcmp.eq.s32.totalorder %v194_v17, 0  ;;  %396 = vmatpush.msra.mxu2 %v1139_v36  ;;  %p1078_p3 = pnand %p1077_p1, %p1216_p13  ;;  %p1083_p7 = por %p1082_p8, %p1081_p12 }
  0x38   : > { %416 = vmatpush.msra.mxu3 %v1139_v36 }
  0x39   : > { %397 = vmatpush.msra.mxu2 %v1139_v36  ;;  %p1079_p5 = pneg %p1078_p3 }
  0x3a   : > { %417 = vmatpush.msra.mxu3 %v1139_v36 }
  0x3b   : > { %398 = vmatpush.msra.mxu2 %v1139_v36  ;;  %p1084_p9 = pnand %p1083_p7, %p1079_p5 }
  0x3c   : > { %418 = vmatpush.msra.mxu3 %v1139_v36 }
  0x3d   : > { %399 = vmatpush.msra.mxu2 %v1139_v36 }
  0x3e   : > { %v230_v3 = vld.sshfl [vmem:[#allocation1] sm:$0xff pattern:$0x75316420]  ;;  %v231_v4 = vld.sshfl [vmem:[#allocation1 + $0x8] sm:$0xff pattern:$0x75316420]  ;;  %419 = vmatpush.msra.mxu3 %v1139_v36 }
  0x3f   : > { %224 = vrot.lane.b32.xlu0 %v219_v2, %s1135_s17  ;;  %234 = vrot.lane.b32.xlu1 %v230_v3, %s1136_s27  ;;  %260 = vst [vmem:[#allocation1] ss:$2 sm:$0xff] %v1261_v0 }
  0x40   : > { %400 = vmatpush.msra.mxu2 %v1139_v36  ;;  %420 = vmatpush.msra.mxu3 %v1139_v36 }
  0x42   : > { %401 = vmatpush.msra.mxu2 %v1139_v36  ;;  %421 = vmatpush.msra.mxu3 %v1139_v36 }
  0x44   : > { %402 = vmatpush.msra.mxu2 %v1139_v36  ;;  %422 = vmatpush.msra.mxu3 %v1139_v36 }
  0x46   : > { %v261_v5 = vld.sshfl [vmem:[#allocation1] sm:$0xff pattern:$0x75316420]  ;;  %v262_v6 = vld.sshfl [vmem:[#allocation1 + $0x8] sm:$0xff pattern:$0x75316420]  ;;  %403 = vmatpush.msra.mxu2 %v1139_v36  ;;  %423 = vmatpush.msra.mxu3 %v1139_v36 }
  0x47   : > { %236 = vrot.lane.b32.xlu1 %v231_v4, %s1136_s27  ;;  %v954_v7 = vpack.i.bf16 %v262_v6, %v261_v5  ;;  %271 = vst [vmem:[#allocation1] ss:$2 sm:$0xff] %v1261_v0 }
  0x48   : > { %404 = vmatpush.msra.mxu2 %v1139_v36  ;;  %424 = vmatpush.msra.mxu3 %v1139_v36 }
  0x49   : > { %955 = vrot.lane.b32.xlu2 %v954_v7, %s1137_s7 }
  0x4a   : > { %405 = vmatpush.msra.mxu2 %v1139_v36  ;;  %425 = vmatpush.msra.mxu3 %v1139_v36 }
  0x4c   : > { %406 = vmatpush.msra.mxu2 %v1139_v36  ;;  %426 = vmatpush.msra.mxu3 %v1139_v36 }
  0x4e   : > { %v272_v8 = vld.sshfl [vmem:[#allocation1] sm:$0xff pattern:$0x75316420]  ;;  %v273_v9 = vld.sshfl [vmem:[#allocation1 + $0x8] sm:$0xff pattern:$0x75316420]  ;;  %407 = vmatpush.msra.mxu2 %v1139_v36  ;;  %427 = vmatpush.msra.mxu3 %v1139_v36 }
  0x4f   : > { %v959_v10 = vpack.i.bf16 %v273_v9, %v272_v8  ;;  %316 = vst [vmem:[#allocation1] ss:$2 sm:$0xff] %v1261_v0 }
  0x51   : > { %960 = vrot.lane.b32.xlu2 %v959_v10, %s1138_s8 }
  0x56   : > { %v317_v1 = vld.sshfl [vmem:[#allocation1] sm:$0xff pattern:$0x75316420]  ;;  %v318_v9 = vld.sshfl [vmem:[#allocation1 + $0x8] sm:$0xff pattern:$0x75316420] }
  0xa3   : > { %v956_v33 = vpop.permute.xlu2 %955 }
  0xa4   : > { %v958_v42 = vunpack.i.h.bf16 %v956_v33  ;;  %v957_v43 = vunpack.i.l.bf16 %v956_v33 }
  0xa6   : > { %v1357_v47 = vsel %vm211_vm7, %v957_v43, %v958_v42  ;;  %v270_v52 = vsel %vm211_vm7, %v958_v42, %v957_v43 }
  0xa9   : > { %v223_v12 = vpop.permute.xlu0 %222 }
  0xab   : > { %v961_v34 = vpop.permute.xlu2 %960 }
  0xac   : > { %v963_v37 = vunpack.i.h.bf16 %v961_v34  ;;  %v962_v38 = vunpack.i.l.bf16 %v961_v34 }
  0xae   : > { %v280_v46 = vsel %vm255_vm6, %v962_v38, %v963_v37  ;;  %v281_v48 = vsel %vm255_vm6, %v963_v37, %v962_v38 }
  0xaf   : > { %v329_v49 = vrot.slane %v280_v46, 4  ;;  %v301_v56 = vsel %vm214_vm8, %v1357_v47, %v281_v48  ;;  %v282_v10 = vsel %vm211_vm7, %v280_v46, %v270_v52 }
  0xb0   : > { %v330_v5 = vrot.slane %v301_v56, 4 }
  0xb1   : > { %v235_v15 = vpop.permute.xlu1 %234  ;;  %v225_v18 = vpop.permute.xlu0 %224 }
  0xb2   : > { %v227_v22 = vsel %vm226_vm0, %v223_v12, %v225_v18  ;;  %v228_v23 = vsel %vm226_vm0, %v225_v18, %v223_v12 }
  0xb9   : > { %v237_v21 = vpop.permute.xlu1 %236 }
  0xba   : > { %v239_v24 = vsel %vm238_vm1, %v235_v15, %v237_v21  ;;  %v240_v25 = vsel %vm238_vm1, %v237_v21, %v235_v15  ;;  %v306_v21 = vrot.slane %v282_v10, 4 }
  0xbb   : > { %v1301_v26 = vsel %vm1283_vm2, %v227_v22, %v240_v25  ;;  %v1305_v27 = vsel %vm1287_vm3, %v228_v23, %v239_v24  ;;  %v1323_v30 = vsel %vm1307_vm4, %v239_v24, %v228_v23  ;;  %v1327_v31 = vsel %vm1311_vm5, %v240_v25, %v227_v22  ;;  %v215_v23 = vld [vmem:[#allocation5] sm:$0xf] }
  0xbc   : > { %286 = vrot.lane.b32.xlu1 %v1301_v26, %s1137_s7  ;;  %284 = vrot.lane.b32.xlu0 %v1305_v27, %s1137_s7  ;;  %v964_v32 = vpack.i.bf16 %v1327_v31, %v1323_v30  ;;  %v323_v51 = vrot.slane %v1305_v27, 4  ;;  %v324_v61 = vrot.slane %v1301_v26, 4  ;;  %v312_v15 = vrot.slane %v1323_v30, 4 }
  0xbd   : > { %290 = vrot.lane.b32.xlu2 %v1305_v27, %s1138_s8  ;;  %v313_v22 = vrot.slane %v1327_v31, 4 }
  0xbe   : > { %v338_v11 = vsel %vm333_vm9, %v317_v1, %v323_v51  ;;  %v339_v18 = vsel %vm333_vm9, %v318_v9, %v324_v61 }
  0xc4   : > { %292 = vrot.lane.b32.xlu0 %v1301_v26, %s1138_s8  ;;  %965 = vrot.lane.b32.xlu1 %v964_v32, %s1137_s7  ;;  %v307_v26 = vrot.slane %v1357_v47, 4 }
  0xc5   : > { %970 = vrot.lane.b32.xlu2 %v964_v32, %s1138_s8  ;;  %v1140_v32 = vmov 0  }
  0xc6   : > { %974 = vset.pattern.permute.xlu0 %v1140_v32  ;;  %975 = vset.pattern.permute.xlu1 %v1140_v32 }
 0x117   : > { %v291_v35 = vpop.permute.xlu2 %290 }
 0x11f   : > { %v971_v39 = vpop.permute.xlu2 %970 }
 0x120   : > { %v973_v44 = vunpack.i.h.bf16 %v971_v39  ;;  %v972_v45 = vunpack.i.l.bf16 %v971_v39 }
 0x122   : > { %v256_v50 = vsel %vm255_vm6, %v972_v45, %v973_v44  ;;  %v257_v2 = vsel %vm255_vm6, %v973_v44, %v972_v45 }
 0x123   : > { %v340_v63 = vsel %vm333_vm9, %v256_v50, %v329_v49 }
 0x12e   : > { %v287_v40 = vpop.permute.xlu1 %286  ;;  %v285_v41 = vpop.permute.xlu0 %284 }
 0x12f   : > { %v288_v53 = vsel %vm211_vm7, %v285_v41, %v287_v40  ;;  %v289_v3 = vsel %vm211_vm7, %v287_v40, %v285_v41 }
 0x130   : > { %v337_v25 = vsel %vm333_vm9, %v288_v53, %v313_v22 }
 0x136   : > { %v293_v54 = vpop.permute.xlu0 %292  ;;  %v966_v55 = vpop.permute.xlu1 %965 }
 0x137   : > { %v295_v57 = vsel %vm255_vm6, %v293_v54, %v291_v35  ;;  %v968_v58 = vunpack.i.h.bf16 %v966_v55  ;;  %v967_v59 = vunpack.i.l.bf16 %v966_v55  ;;  %v294_v60 = vsel %vm255_vm6, %v291_v35, %v293_v54 }
 0x138   : > { %874 = vmatpush.msk.msra.mxu0 %vm333_vm9, %v294_v60  ;;  %v303_v62 = vsel %vm214_vm8, %v288_v53, %v295_v57  ;;  %v296_v8 = vsel %vm211_vm7, %v294_v60, %v289_v3 }
 0x139   : > { %876 = vmatpush.msk.msra.mxu1 %vm333_vm9, %v303_v62  ;;  %v249_v4 = vsel %vm211_vm7, %v967_v59, %v968_v58  ;;  %v250_v6 = vsel %vm211_vm7, %v968_v58, %v967_v59  ;;  %v336_v17 = vsel %vm333_vm9, %v296_v8, %v312_v15 }
 0x13a   : > { %364 = vmatpush.msra.mxu0 %v340_v63  ;;  %v299_v7 = vsel %vm214_vm8, %v249_v4, %v257_v2  ;;  %v258_v16 = vsel %vm211_vm7, %v256_v50, %v250_v6  ;;  %v335_v27 = vsel %vm333_vm9, %v249_v4, %v307_v26 }
 0x13b   : > { %v341_v12 = vsel %vm333_vm9, %v299_v7, %v330_v5  ;;  %v334_v24 = vsel %vm333_vm9, %v258_v16, %v306_v21 }
 0x13c   : > { %365 = vmatpush.msra.mxu0 %v338_v11  ;;  %384 = vmatpush.msra.mxu1 %v341_v12 }
 0x13e   : > { %366 = vmatpush.msra.mxu0 %v336_v17  ;;  %385 = vmatpush.msra.mxu1 %v339_v18 }
 0x140   : > { %367 = vmatpush.msra.mxu0 %v334_v24  ;;  %386 = vmatpush.msra.mxu1 %v337_v25 }
 0x141   : > { %875 = vmatmul.msk.f32.vlgmr.msra.gmra.mxu0 %vm342_vm10, %v215_v23 }
 0x142   : > { %387 = vmatpush.msra.mxu1 %v335_v27  ;;  %442 = vmatpush.msrb.mxu0 %v1139_v36 }
 0x143   : > { %877 = vmatmul.msk.f32.vlgmr.msra.gmra.mxu1 %vm342_vm10, %v215_v23 }
 0x144   : > { %462 = vmatpush.msrb.mxu1 %v1139_v36  ;;  %443 = vmatpush.msrb.mxu0 %v1139_v36 }
 0x146   : > { %463 = vmatpush.msrb.mxu1 %v1139_v36  ;;  %444 = vmatpush.msrb.mxu0 %v1139_v36 }
 0x148   : > { %464 = vmatpush.msrb.mxu1 %v1139_v36  ;;  %445 = vmatpush.msrb.mxu0 %v1139_v36 }
 0x14a   : > { %465 = vmatpush.msrb.mxu1 %v1139_v36  ;;  %446 = vmatpush.msrb.mxu0 %v1139_v36 }
 0x14c   : > { %466 = vmatpush.msrb.mxu1 %v1139_v36  ;;  %447 = vmatpush.msrb.mxu0 %v1139_v36 }
 0x14e   : > { %467 = vmatpush.msrb.mxu1 %v1139_v36  ;;  %448 = vmatpush.msrb.mxu0 %v1139_v36 }
 0x150   : > { %468 = vmatpush.msrb.mxu1 %v1139_v36  ;;  %449 = vmatpush.msrb.mxu0 %v1139_v36 }
 0x152   : > { %469 = vmatpush.msrb.mxu1 %v1139_v36  ;;  %450 = vmatpush.msrb.mxu0 %v1139_v36 }
 0x154   : > { %470 = vmatpush.msrb.mxu1 %v1139_v36  ;;  %451 = vmatpush.msrb.mxu0 %v1139_v36 }
 0x156   : > { %471 = vmatpush.msrb.mxu1 %v1139_v36  ;;  %452 = vmatpush.msrb.mxu0 %v1139_v36 }
 0x158   : > { %472 = vmatpush.msrb.mxu1 %v1139_v36  ;;  %453 = vmatpush.msrb.mxu0 %v1139_v36 }
 0x15a   : > { %473 = vmatpush.msrb.mxu1 %v1139_v36  ;;  %454 = vmatpush.msrb.mxu0 %v1139_v36 }
 0x15c   : > { %474 = vmatpush.msrb.mxu1 %v1139_v36  ;;  %455 = vmatpush.msrb.mxu0 %v1139_v36 }
 0x15e   : > { %475 = vmatpush.msrb.mxu1 %v1139_v36  ;;  %456 = vmatpush.msrb.mxu0 %v1139_v36 }
 0x160   : > { %476 = vmatpush.msrb.mxu1 %v1139_v36  ;;  %457 = vmatpush.msrb.mxu0 %v1139_v36 }
 0x162   : > { %477 = vmatpush.msrb.mxu1 %v1139_v36  ;;  %650 = vmatpush.msra.mxu0 %v1139_v36 }
 0x164   : > { %670 = vmatpush.msra.mxu1 %v1139_v36  ;;  %651 = vmatpush.msra.mxu0 %v1139_v36 }
 0x166   : > { %671 = vmatpush.msra.mxu1 %v1139_v36  ;;  %652 = vmatpush.msra.mxu0 %v1139_v36 }
 0x168   : > { %672 = vmatpush.msra.mxu1 %v1139_v36  ;;  %653 = vmatpush.msra.mxu0 %v1139_v36 }
 0x16a   : > { %673 = vmatpush.msra.mxu1 %v1139_v36  ;;  %654 = vmatpush.msra.mxu0 %v1139_v36 }
 0x16c   : > { %674 = vmatpush.msra.mxu1 %v1139_v36  ;;  %655 = vmatpush.msra.mxu0 %v1139_v36 }
 0x16e   : > { %675 = vmatpush.msra.mxu1 %v1139_v36  ;;  %656 = vmatpush.msra.mxu0 %v1139_v36 }
 0x170   : > { %676 = vmatpush.msra.mxu1 %v1139_v36  ;;  %657 = vmatpush.msra.mxu0 %v1139_v36 }
 0x172   : > { %677 = vmatpush.msra.mxu1 %v1139_v36  ;;  %658 = vmatpush.msra.mxu0 %v1139_v36 }
 0x174   : > { %678 = vmatpush.msra.mxu1 %v1139_v36  ;;  %659 = vmatpush.msra.mxu0 %v1139_v36 }
 0x176   : > { %679 = vmatpush.msra.mxu1 %v1139_v36  ;;  %660 = vmatpush.msra.mxu0 %v1139_v36 }
 0x178   : > { %680 = vmatpush.msra.mxu1 %v1139_v36  ;;  %661 = vmatpush.msra.mxu0 %v1139_v36 }
 0x17a   : > { %681 = vmatpush.msra.mxu1 %v1139_v36  ;;  %662 = vmatpush.msra.mxu0 %v1139_v36 }
 0x17c   : > { %682 = vmatpush.msra.mxu1 %v1139_v36  ;;  %663 = vmatpush.msra.mxu0 %v1139_v36 }
 0x17e   : > { %683 = vmatpush.msra.mxu1 %v1139_v36  ;;  %664 = vmatpush.msra.mxu0 %v1139_v36 }
 0x180   : > { %684 = vmatpush.msra.mxu1 %v1139_v36  ;;  %665 = vmatpush.msra.mxu0 %v1139_v36 }
 0x182   : > { %685 = vmatpush.msra.mxu1 %v1139_v36 }
 0x1be   : > { %v369_v30 = vpop.f32.mrf.mxu0 }
 0x1bf   : > { %408 = vmatmul.f32.vlgmr.msra.gmra.mxu2 %v369_v30 }
 0x1c0   : > { %v389_v31 = vpop.f32.mrf.mxu1 }
 0x1c1   : > { %428 = vmatmul.f32.vlgmr.msra.gmra.mxu3 %v389_v31 }
 0x242   : > { %v409_v33 = vpop.f32.mrf.mxu2 }
 0x244   : > { %v429_v34 = vpop.f32.mrf.mxu3 }
 0x245   : > { %v430_v35 = vadd.f32 %v429_v34, %v409_v33 }
 0x247   : > { %v432_v37 = vmul.f32 0.00390625, %v430_v35 }
 0x249   : > { %435 = vperm.xlu0 %974, %v432_v37  }
 0x2bb   : > { %v436_v38 = vpop.permute.xlu0 %435 }
 0x2bc   : > { %v438_v39 = vsub.f32 %v369_v30, %v436_v38  ;;  %v439_v40 = vsub.f32 %v389_v31, %v436_v38 }
 0x2be   : > { %v440_v41 = vmul.f32 %v438_v39, %v438_v39  ;;  %v441_v42 = vmul.f32 %v439_v40, %v439_v40 }
 0x2c0   : > { %458 = vmatmul.f32.vlgmr.msrb.gmra.mxu0 %v440_v41  ;;  %478 = vmatmul.f32.vlgmr.msrb.gmra.mxu1 %v441_v42 }
 0x33d   : > { %v459_v43 = vpop.f32.mrf.mxu0  ;;  %v479_v44 = vpop.f32.mrf.mxu1 }
 0x33e   : > { %v480_v45 = vadd.f32 %v479_v44, %v459_v43 }
 0x340   : > { %v482_v46 = vmul.f32 0.00390625, %v480_v45 }
 0x342   : > { %v483_v47 = vadd.f32 1e-05, %v482_v46 }
 0x344   : > { %996 = vrsqrt.f32 %v483_v47  ;;  %vm490_vm12 = vweird.f32 %v483_v47 }
 0x34a   : > { %v997_v48 = vpop.eup %996 }
 0x34b   : > { %v485_v49 = vmul.f32 %v997_v48, %v483_v47  ;;  %vm491_vm11 = vweird.f32 %v997_v48 }
 0x34c   : > { %vm492_vm13 = vmor %vm490_vm12, %vm491_vm11 }
 0x34d   : > { %v486_v50 = vmul.f32 %v997_v48, %v485_v49 }
 0x34f   : > { %v487_v51 = vmul.f32 0.5, %v486_v50 }
 0x351   : > { %v488_v52 = vsub.f32 1.5, %v487_v51 }
 0x353   : > { %v489_v53 = vmul.f32 %v997_v48, %v488_v52 }
 0x355   : > { %v493_v54 = vsel %vm492_vm13, %v997_v48, %v489_v53 }
 0x356   : > { %496 = vperm.xlu1 %975, %v493_v54  }
 0x3c8   : > { %v497_v55 = vpop.permute.xlu1 %496 }
 0x3c9   : > { %v499_v56 = vmul.f32 %v497_v55, %v438_v39  ;;  %v500_v57 = vmul.f32 %v497_v55, %v439_v40 }
 0x3cb   : > { %v1490_v58 = vmax.f32 %v499_v56, 0.0  ;;  %v1492_v59 = vmax.f32 %v500_v57, 0.0 }
 0x3cd   : > { %513 = vrot.lane.b32.xlu0 %v1492_v59, %s1136_s27  ;;  %507 = vrot.lane.b32.xlu1 %v1492_v59, %s1135_s17  ;;  %v976_v60 = vpack.i.bf16 %v1492_v59, %v1490_v58 }
 0x3ce   : > { %505 = vrot.lane.b32.xlu2 %v1490_v58, %s1135_s17 }
 0x3d5   : > { %977 = vrot.lane.b32.xlu1 %v976_v60, %s1137_s7 }
 0x3d6   : > { %511 = vrot.lane.b32.xlu2 %v1490_v58, %s1136_s27 }
 0x3de   : > { %982 = vrot.lane.b32.xlu2 %v976_v60, %s1138_s8 }
 0x428   : > { %v506_v61 = vpop.permute.xlu2 %505 }
 0x430   : > { %v512_v62 = vpop.permute.xlu2 %511 }
 0x438   : > { %v983_v19 = vpop.permute.xlu2 %982 }
 0x439   : > { %v985_v15 = vunpack.i.h.bf16 %v983_v19  ;;  %v984_v16 = vunpack.i.l.bf16 %v983_v19 }
 0x43b   : > { %v545_v24 = vsel %vm255_vm6, %v984_v16, %v985_v15  ;;  %v546_v25 = vsel %vm255_vm6, %v985_v15, %v984_v16 }
 0x43c   : > { %v589_v30 = vrot.slane %v545_v24, 4 }
 0x43f   : > { %v514_v63 = vpop.permute.xlu0 %513  ;;  %v508_v1 = vpop.permute.xlu1 %507 }
 0x440   : > { %v515_v2 = vsel %vm238_vm1, %v512_v62, %v514_v63  ;;  %v516_v3 = vsel %vm238_vm1, %v514_v63, %v512_v62  ;;  %v509_v4 = vsel %vm226_vm0, %v506_v61, %v508_v1  ;;  %v510_v5 = vsel %vm226_vm0, %v508_v1, %v506_v61  ;;  %v504_v63 = vld [vmem:[#allocation5 + $0x4] sm:$0xf] }
 0x441   : > { %v520_v6 = vsel %vm1283_vm2, %v509_v4, %v516_v3  ;;  %v519_v7 = vsel %vm1287_vm3, %v510_v5, %v515_v2  ;;  %v517_v8 = vsel %vm1307_vm4, %v515_v2, %v510_v5  ;;  %v518_v9 = vsel %vm1311_vm5, %v516_v3, %v509_v4 }
 0x442   : > { %551 = vrot.lane.b32.xlu1 %v520_v6, %s1137_s7  ;;  %555 = vrot.lane.b32.xlu2 %v519_v7, %s1138_s8  ;;  %v991_v10 = vpack.i.bf16 %v518_v9, %v517_v8  ;;  %v584_v26 = vrot.slane %v520_v6, 4  ;;  %v583_v32 = vrot.slane %v519_v7, 4  ;;  %v577_v54 = vrot.slane %v517_v8, 4 }
 0x443   : > { %549 = vrot.lane.b32.xlu0 %v519_v7, %s1137_s7  ;;  %v578_v56 = vrot.slane %v518_v9, 4 }
 0x444   : > { %v597_v53 = vsel %vm333_vm9, %v1490_v58, %v583_v32  ;;  %v598_v14 = vsel %vm333_vm9, %v1492_v59, %v584_v26 }
 0x447   : > { %v978_v20 = vpop.permute.xlu1 %977 }
 0x448   : > { %v980_v17 = vunpack.i.h.bf16 %v978_v20  ;;  %v979_v18 = vunpack.i.l.bf16 %v978_v20 }
 0x44a   : > { %992 = vrot.lane.b32.xlu2 %v991_v10, %s1138_s8  ;;  %987 = vrot.lane.b32.xlu1 %v991_v10, %s1137_s7  ;;  %v539_v29 = vsel %vm211_vm7, %v979_v18, %v980_v17  ;;  %v540_v38 = vsel %vm211_vm7, %v980_v17, %v979_v18 }
 0x44b   : > { %557 = vrot.lane.b32.xlu0 %v520_v6, %s1138_s8  ;;  %v566_v31 = vsel %vm214_vm8, %v539_v29, %v546_v25  ;;  %v547_v52 = vsel %vm211_vm7, %v545_v24, %v540_v38  ;;  %v572_v62 = vrot.slane %v539_v29, 4 }
 0x44c   : > { %v590_v45 = vrot.slane %v566_v31, 4  ;;  %v571_v60 = vrot.slane %v547_v52, 4 }
 0x49c   : > { %v556_v11 = vpop.permute.xlu2 %555 }
 0x4a4   : > { %v993_v21 = vpop.permute.xlu2 %992 }
 0x4a5   : > { %v995_v22 = vunpack.i.h.bf16 %v993_v21  ;;  %v994_v23 = vunpack.i.l.bf16 %v993_v21 }
 0x4a7   : > { %v531_v37 = vsel %vm255_vm6, %v994_v23, %v995_v22  ;;  %v532_v44 = vsel %vm255_vm6, %v995_v22, %v994_v23 }
 0x4a8   : > { %v599_v47 = vsel %vm333_vm9, %v531_v37, %v589_v30 }
 0x4b4   : > { %v552_v12 = vpop.permute.xlu1 %551 }
 0x4b5   : > { %v550_v28 = vpop.permute.xlu0 %549 }
 0x4b6   : > { %v553_v39 = vsel %vm211_vm7, %v550_v28, %v552_v12  ;;  %v554_v46 = vsel %vm211_vm7, %v552_v12, %v550_v28 }
 0x4b7   : > { %v596_v61 = vsel %vm333_vm9, %v553_v39, %v578_v56 }
 0x4bc   : > { %v988_v27 = vpop.permute.xlu1 %987 }
 0x4bd   : > { %v558_v33 = vpop.permute.xlu0 %557  ;;  %v990_v34 = vunpack.i.h.bf16 %v988_v27  ;;  %v989_v35 = vunpack.i.l.bf16 %v988_v27 }
 0x4be   : > { %v560_v40 = vsel %vm255_vm6, %v558_v33, %v556_v11  ;;  %v559_v41 = vsel %vm255_vm6, %v556_v11, %v558_v33 }
 0x4bf   : > { %878 = vmatpush.msk.msrb.mxu2 %vm333_vm9, %v559_v41  ;;  %v568_v42 = vsel %vm214_vm8, %v553_v39, %v560_v40  ;;  %v525_v43 = vsel %vm211_vm7, %v989_v35, %v990_v34  ;;  %v526_v49 = vsel %vm211_vm7, %v990_v34, %v989_v35  ;;  %v561_v51 = vsel %vm211_vm7, %v559_v41, %v554_v46 }
 0x4c0   : > { %880 = vmatpush.msk.msrb.mxu3 %vm333_vm9, %v568_v42  ;;  %v564_v48 = vsel %vm214_vm8, %v525_v43, %v532_v44  ;;  %v533_v55 = vsel %vm211_vm7, %v531_v37, %v526_v49  ;;  %v595_v57 = vsel %vm333_vm9, %v561_v51, %v577_v54  ;;  %v594_v1 = vsel %vm333_vm9, %v525_v43, %v572_v62 }
 0x4c1   : > { %622 = vmatpush.msrb.mxu2 %v599_v47  ;;  %v600_v50 = vsel %vm333_vm9, %v564_v48, %v590_v45  ;;  %v593_v58 = vsel %vm333_vm9, %v533_v55, %v571_v60 }
 0x4c2   : > { %642 = vmatpush.msrb.mxu3 %v600_v50 }
 0x4c3   : > { %623 = vmatpush.msrb.mxu2 %v597_v53 }
 0x4c4   : > { %643 = vmatpush.msrb.mxu3 %v598_v14 }
 0x4c5   : > { %624 = vmatpush.msrb.mxu2 %v595_v57 }
 0x4c6   : > { %644 = vmatpush.msrb.mxu3 %v596_v61 }
 0x4c7   : > { %625 = vmatpush.msrb.mxu2 %v593_v58 }
 0x4c8   : > { %645 = vmatpush.msrb.mxu3 %v594_v1  ;;  %879 = vmatmul.msk.f32.vlgmr.msrb.gmra.mxu2 %vm342_vm10, %v504_v63 }
 0x4c9   : > { %881 = vmatmul.msk.f32.vlgmr.msrb.gmra.mxu3 %vm342_vm10, %v504_v63  ;;  %700 = vmatpush.msra.mxu2 %v1139_v36 }
 0x4ca   : > { %720 = vmatpush.msra.mxu3 %v1139_v36 }
 0x4cb   : > { %701 = vmatpush.msra.mxu2 %v1139_v36 }
 0x4cc   : > { %721 = vmatpush.msra.mxu3 %v1139_v36 }
 0x4cd   : > { %702 = vmatpush.msra.mxu2 %v1139_v36 }
 0x4ce   : > { %722 = vmatpush.msra.mxu3 %v1139_v36 }
 0x4cf   : > { %703 = vmatpush.msra.mxu2 %v1139_v36 }
 0x4d0   : > { %723 = vmatpush.msra.mxu3 %v1139_v36 }
 0x4d1   : > { %704 = vmatpush.msra.mxu2 %v1139_v36 }
 0x4d2   : > { %724 = vmatpush.msra.mxu3 %v1139_v36 }
 0x4d3   : > { %705 = vmatpush.msra.mxu2 %v1139_v36 }
 0x4d4   : > { %725 = vmatpush.msra.mxu3 %v1139_v36 }
 0x4d5   : > { %706 = vmatpush.msra.mxu2 %v1139_v36 }
 0x4d6   : > { %726 = vmatpush.msra.mxu3 %v1139_v36 }
 0x4d7   : > { %707 = vmatpush.msra.mxu2 %v1139_v36 }
 0x4d8   : > { %727 = vmatpush.msra.mxu3 %v1139_v36 }
 0x4d9   : > { %708 = vmatpush.msra.mxu2 %v1139_v36 }
 0x4da   : > { %728 = vmatpush.msra.mxu3 %v1139_v36 }
 0x4db   : > { %709 = vmatpush.msra.mxu2 %v1139_v36 }
 0x4dc   : > { %729 = vmatpush.msra.mxu3 %v1139_v36 }
 0x4dd   : > { %710 = vmatpush.msra.mxu2 %v1139_v36 }
 0x4de   : > { %730 = vmatpush.msra.mxu3 %v1139_v36 }
 0x4df   : > { %711 = vmatpush.msra.mxu2 %v1139_v36 }
 0x4e0   : > { %731 = vmatpush.msra.mxu3 %v1139_v36 }
 0x4e1   : > { %712 = vmatpush.msra.mxu2 %v1139_v36 }
 0x4e2   : > { %732 = vmatpush.msra.mxu3 %v1139_v36 }
 0x4e3   : > { %713 = vmatpush.msra.mxu2 %v1139_v36 }
 0x4e4   : > { %733 = vmatpush.msra.mxu3 %v1139_v36 }
 0x4e5   : > { %714 = vmatpush.msra.mxu2 %v1139_v36 }
 0x4e6   : > { %734 = vmatpush.msra.mxu3 %v1139_v36 }
 0x4e7   : > { %715 = vmatpush.msra.mxu2 %v1139_v36 }
 0x4e8   : > { %735 = vmatpush.msra.mxu3 %v1139_v36 }
 0x54b   : > { %v627_v13 = vpop.f32.mrf.mxu2 }
 0x54c   : > { %v647_v59 = vpop.f32.mrf.mxu3  ;;  %666 = vmatmul.f32.vlgmr.msra.gmra.mxu0 %v627_v13 }
 0x54d   : > { %686 = vmatmul.f32.vlgmr.msra.gmra.mxu1 %v647_v59 }
 0x5c9   : > { %v667_v2 = vpop.f32.mrf.mxu0 }
 0x5ca   : > { %v687_v3 = vpop.f32.mrf.mxu1 }
 0x5cb   : > { %v688_v4 = vadd.f32 %v687_v3, %v667_v2 }
 0x5cd   : > { %v690_v5 = vmul.f32 0.00390625, %v688_v4 }
 0x5cf   : > { %693 = vperm.xlu0 %974, %v690_v5  }
 0x641   : > { %v694_v6 = vpop.permute.xlu0 %693 }
 0x642   : > { %v696_v7 = vsub.f32 %v627_v13, %v694_v6  ;;  %v697_v8 = vsub.f32 %v647_v59, %v694_v6 }
 0x644   : > { %v698_v9 = vmul.f32 %v696_v7, %v696_v7  ;;  %v699_v10 = vmul.f32 %v697_v8, %v697_v8 }
 0x646   : > { %716 = vmatmul.f32.vlgmr.msra.gmra.mxu2 %v698_v9  ;;  %736 = vmatmul.f32.vlgmr.msra.gmra.mxu3 %v699_v10 }
 0x6c9   : > { %v717_v19 = vpop.f32.mrf.mxu2  ;;  %v737_v20 = vpop.f32.mrf.mxu3 }
 0x6ca   : > { %v738_v36 = vadd.f32 %v737_v20, %v717_v19 }
 0x6cc   : > { %v740_v11 = vmul.f32 0.00390625, %v738_v36 }
 0x6ce   : > { %v741_v12 = vadd.f32 1e-05, %v740_v11 }
 0x6d0   : > { %998 = vrsqrt.f32 %v741_v12  ;;  %vm748_vm15 = vweird.f32 %v741_v12 }
 0x6d6   : > { %v999_v15 = vpop.eup %998 }
 0x6d7   : > { %v743_v16 = vmul.f32 %v999_v15, %v741_v12  ;;  %vm749_vm14 = vweird.f32 %v999_v15 }
 0x6d8   : > { %vm750_vm0 = vmor %vm748_vm15, %vm749_vm14 }
 0x6d9   : > { %v744_v17 = vmul.f32 %v999_v15, %v743_v16 }
 0x6db   : > { %v745_v18 = vmul.f32 0.5, %v744_v17 }
 0x6dd   : > { %v746_v28 = vsub.f32 1.5, %v745_v18 }
 0x6df   : > { %v747_v21 = vmul.f32 %v999_v15, %v746_v28 }
 0x6e1   : > { %v751_v29 = vsel %vm750_vm0, %v999_v15, %v747_v21 }
 0x6e2   : > { %754 = vperm.xlu1 %975, %v751_v29  }
 0x754   : > { %v755_v22 = vpop.permute.xlu1 %754 }
 0x755   : > { %v758_v23 = vmul.f32 %v755_v22, %v697_v8  ;;  %v757_v24 = vmul.f32 %v755_v22, %v696_v7 }
 0x757   : > { %v761_v25 = vrot.slane %v758_v23, 4 }
 0x759   : > { %v762_v26 = vsel %vm333_vm9, %v757_v24, %v761_v25 }
 0x75a   : > { %v764_v27 = vadd.f32 %v762_v26, %v1261_v0 }
 0x75c   : > { %765 = vst [vmem:[%s178_s19] sm:$0xff] %v764_v27 }
 0x75d   : > { %1087 = shalt.err (!%p1084_p9)
}
 0x75e   : > { %895 = dma.vmem_to_hbm [thread:$0]  (%p1216_p13), %s781_s20, 128, %s783_s21, %s767_s16  }
 0x75f PF: > { %s794_s29 = sand.u32 1, %s1118_s9   ;;  %p1663_p10 = scmp.ge.s32.totalorder %s1130_s12, 2 }
 0x760   : > { %s795_s17 = scalar_lea.sflag [#allocation4], %s794_s29 }
 0x761   : > { %p906_p11 = pnand %p1663_p10, %p1221_p4 }
 0x763   : > { %p907_p0 = pneg %p906_p11 }
 0x765   : > { %1113 = dma.done.wait (%p907_p0), %s795_s17, 128  }
 0x766   : > { %1115 = vsyncadd (%p907_p0), %s795_s17, 4294967168  ;;  %p16_p2 = scmp.ge.s32.totalorder %s1196_s23, 4   ;;  %s1664_s9 = smov %s1122_s10 }
 0x767   : > { %s1665_s10 = smov %s1126_s11  ;;  %s1666_s11 = smov %s1208_s26 }
 0x768   : > { %s1667_s12 = smov %s1196_s23  ;;  %18 = sbr.rel (!%p16_p2) target bundleno = 6 (0x6), region = 78 }
 0x76d   :  { %801 = vsyncpa [#allocation3], 1 }
 0x76e   :  { %803 = vsyncpa [#allocation3 + $0x1], 1 }
 0x76f   :  { %804 = vsyncpa [#allocation6], 1 }
 0x770   :  { %805 = vsyncpa [#allocation4], 1 }
 0x771   :  { %807 = vsyncpa [#allocation4 + $0x1], 1 }

</bundles_post_ra>
